<compile_context>
chip_gen: v7x
topology: tpu7x:2x2x1
jax: 0.10.0
libtpu: 0.0.40
codegen_flags: <defaults>
</compile_context>

<pallas_src>
import numpy as np
import jax
import jax.numpy as jnp
from jax.experimental import pallas as pl
from jax.experimental.pallas import tpu as pltpu


# ----------------------------------------------------------------------------
# Pallas kernel: per-sample channel-mixing matmul  out = W @ x  on (C, t_hw).
# ----------------------------------------------------------------------------
def _cond_conv1x1_kernel(w_ref, x_ref, o_ref):
    # w_ref: (C, C) weight for this batch element (batch dim squeezed out)
    # x_ref: (C, t_hw) slab of the flattened input
    # o_ref: (C, t_hw) slab of the output (lane-dense: H*W sits in lanes)
    o_ref[...] = jnp.dot(
        w_ref[...], x_ref[...], preferred_element_type=jnp.float32
    ).astype(o_ref.dtype)


def _pick_hw_tile(hw, c, dtype_bytes=4, budget_bytes=4 << 20):
    """Lane tile along the H*W axis.

    Multiple of 128 (lane width) and sized so (input + output block) x 2
    double-buffers stay within ~budget_bytes — comfortably inside the scoped
    VMEM limit on v5e/v6e and v7x's smaller 64 MiB VMEM.
    """
    if hw <= 128:
        return hw  # full-extent block (allowed when it equals the array dim)
    max_t = budget_bytes // (2 * 2 * c * dtype_bytes)
    t = min(hw, max_t)
    t = max(128, (t // 128) * 128)
    return t


def cond_inv_conv1x1_forward(x_nchw, w_per_sample):
    """Forward pass of InvConv1x1Conditional given per-sample weights.

    Args:
      x_nchw:       (N, C, H, W) input, float32.
      w_per_sample: (N, C, C) per-sample weight matrices W_n[o, i].

    Returns:
      (out_nchw, log_det): out_nchw (N, C, H, W); log_det scalar
      = H*W * mean_n slogdet(W_n).
    """
    N, C, H, W = x_nchw.shape
    HW = H * W

    # Free reshape — no transpose, no extra HBM traffic.
    x_rows = x_nchw.reshape(N, C, HW)

    t_hw = _pick_hw_tile(HW, C)
    n_hw = pl.cdiv(HW, t_hw)

    out_rows = pl.pallas_call(
        _cond_conv1x1_kernel,
        out_shape=jax.ShapeDtypeStruct((N, C, HW), x_rows.dtype),
        grid_spec=pltpu.PrefetchScalarGridSpec(
            num_scalar_prefetch=0,
            grid=(N, n_hw),
            in_specs=[
                # Per-sample weight: constant across the inner HW axis, so it
                # is only DMA'd when n changes.
                pl.BlockSpec((None, C, C), lambda n, j: (n, 0, 0)),
                pl.BlockSpec((None, C, t_hw), lambda n, j: (n, 0, j)),
            ],
            out_specs=pl.BlockSpec((None, C, t_hw), lambda n, j: (n, 0, j)),
        ),
        compiler_params=pltpu.CompilerParams(
            dimension_semantics=("parallel", "parallel")
        ),
    )(w_per_sample, x_rows)

    out_nchw = out_rows.reshape(N, C, H, W)  # free reshape back

    # Per-sample log|det W_n|, averaged over the batch, scaled by spatial size.
    # TODO(synk): PyTorch computes slogdet in float64 (`.double()`); JAX default
    # is float32 here (difference is negligible for well-conditioned C x C W).
    _, logabsdet = jnp.linalg.slogdet(w_per_sample)          # (N,)
    log_w = jnp.sum(logabsdet) / jnp.float32(N)
    log_det = jnp.float32(H * W) * log_w
    return out_nchw, log_det


# ----------------------------------------------------------------------------
# Conditioning network stand-in.
# ----------------------------------------------------------------------------
# TODO(synk): WCondNet's architecture is not provided in the module source.
# This deterministic stand-in (global-average-pool -> linear -> C x C delta
# added to a fixed orthogonal base) produces per-sample invertible weights with
# the same interface: cond_net(condition) -> (N, C, C).
def make_cond_net_params(cond_channels, in_channel, seed=0):
    rng = np.random.RandomState(seed)
    q, _ = np.linalg.qr(rng.randn(in_channel, in_channel))   # orthogonal base
    proj = 0.01 * rng.randn(cond_channels, in_channel * in_channel)
    return jnp.asarray(q, jnp.float32), jnp.asarray(proj, jnp.float32)


def cond_net_forward(condition_nchw, q_base, proj):
    N = condition_nchw.shape[0]
    C = q_base.shape[0]
    pooled = jnp.mean(condition_nchw, axis=(2, 3))            # (N, C_cond)
    delta = (pooled @ proj).reshape(N, C, C)                  # small perturbation
    return q_base[None, :, :] + delta                         # (N, C, C), invertible


if __name__ == "__main__":
    N, C, H, W = 2, 4, 16, 16
    C_COND = 4

    key = jax.random.PRNGKey(0)
    k_x, k_cond = jax.random.split(key)
    x = jax.random.normal(k_x, (N, C, H, W), dtype=jnp.float32)
    condition = jax.random.normal(k_cond, (N, C_COND, H, W), dtype=jnp.float32)

    q_base, proj = make_cond_net_params(C_COND, C, seed=0)
    w_per_sample = cond_net_forward(condition, q_base, proj)  # (N, C, C)

    out, log_det = cond_inv_conv1x1_forward(x, w_per_sample)
    out = jax.block_until_ready(out)
    log_det = jax.block_until_ready(log_det)

    # Pure-JAX / numpy reference (per-sample 1x1 conv == batched channel matmul).
    ref = jnp.einsum("noi,nihw->nohw", w_per_sample, x)
    w_np = np.asarray(w_per_sample, dtype=np.float64)
    ref_log_w = np.mean([np.linalg.slogdet(w_np[i])[1] for i in range(N)])
    ref_logdet = float(H * W) * ref_log_w

    assert out.shape == (N, C, H, W)
    np.testing.assert_allclose(np.asarray(out), np.asarray(ref),
                               rtol=1e-5, atol=1e-5)
    np.testing.assert_allclose(float(log_det), ref_logdet,
                               rtol=1e-3, atol=1e-2)

    print("KERNEL_OK")
</pallas_src>

<mosaic_0001>
module attributes {stable_mosaic.version = 11 : i64} {
  func.func @_cond_conv1x1_kernel(%arg0: i32, %arg1: i32, %arg2: memref<1x4x4xf32, #tpu.memory_space<vmem>>, %arg3: memref<1x4x256xf32, #tpu.memory_space<vmem>>, %arg4: memref<1x4x256xf32, #tpu.memory_space<vmem>>) attributes {dimension_semantics = [#tpu.dimension_semantics<parallel>, #tpu.dimension_semantics<parallel>], iteration_bounds = array<i64: 2, 1>, scalar_prefetch = 0 : i64, scratch_operands = 0 : i64, tpu.core_type = #tpu.core_type<tc>, window_params = [{transform_indices = @transform_0, window_bounds = array<i64: 1, 4, 4>}, {transform_indices = @transform_1, window_bounds = array<i64: 1, 4, 256>}, {transform_indices = @transform_2, window_bounds = array<i64: 1, 4, 256>}]} {
    %c0 = arith.constant 0 : index
    %c0_0 = arith.constant 0 : index
    %c0_1 = arith.constant 0 : index
    %0 = vector.load %arg2[%c0, %c0_0, %c0_1] : memref<1x4x4xf32, #tpu.memory_space<vmem>>, vector<1x4x4xf32>
    %1 = vector.shape_cast %0 : vector<1x4x4xf32> to vector<4x4xf32>
    %c0_2 = arith.constant 0 : index
    %c0_3 = arith.constant 0 : index
    %c0_4 = arith.constant 0 : index
    %2 = vector.load %arg3[%c0_2, %c0_3, %c0_4] : memref<1x4x256xf32, #tpu.memory_space<vmem>>, vector<1x4x256xf32>
    %3 = vector.shape_cast %2 : vector<1x4x256xf32> to vector<4x256xf32>
    %cst = arith.constant dense<0.000000e+00> : vector<4x256xf32>
    %4 = tpu.matmul %1, %3, %cst {dimension_numbers = #tpu.dot_dimension_numbers<[1], [0], [0], [1], [0, 0, 1, 1], [], []>} : vector<4x4xf32>, vector<4x256xf32>, vector<4x256xf32> -> vector<4x256xf32>
    %c0_5 = arith.constant 0 : index
    %c0_6 = arith.constant 0 : index
    %c0_7 = arith.constant 0 : index
    %5 = vector.load %arg4[%c0_5, %c0_6, %c0_7] : memref<1x4x256xf32, #tpu.memory_space<vmem>>, vector<1x4x256xf32>
    %6 = vector.shape_cast %5 : vector<1x4x256xf32> to vector<4x256xf32>
    %7 = vector.shape_cast %4 : vector<4x256xf32> to vector<1x4x256xf32>
    tpu.vector_store %arg4[%c0_5, %c0_6, %c0_7], %7 {strides = array<i32>} : memref<1x4x256xf32, #tpu.memory_space<vmem>>, vector<1x4x256xf32>,
    return
  }
  func.func @transform_0(%arg0: i32, %arg1: i32) -> (i32, i32, i32) {
    %c0_i32 = arith.constant 0 : i32
    %c0_i32_0 = arith.constant 0 : i32
    %c0_i32_1 = arith.constant 0 : i32
    return %arg0, %c0_i32, %c0_i32_0 : i32, i32, i32
  }
  func.func @transform_1(%arg0: i32, %arg1: i32) -> (i32, i32, i32) {
    %c0_i32 = arith.constant 0 : i32
    %c0_i32_0 = arith.constant 0 : i32
    return %arg0, %c0_i32, %arg1 : i32, i32, i32
  }
  func.func @transform_2(%arg0: i32, %arg1: i32) -> (i32, i32, i32) {
    %c0_i32 = arith.constant 0 : i32
    %c0_i32_0 = arith.constant 0 : i32
    return %arg0, %c0_i32, %arg1 : i32, i32, i32
  }
}

</mosaic_0001>

<bundles_post_ra>
// kernel: tpu_custom_call.1
= control target key start
LH: loop header
LB: loop body
LE: loop exit
PB: predicated region body
PF: predicated region fallthrough
CT: control target
= control target key end

     0   :  { %7 = vsyncpa [#allocation3], 0  ;;  %s904_s0 = inlined_call_operand.hbm [shape: f32[2,4,4], index: 0, kind: input, shape index: {}]   ;;  %s905_s1 = inlined_call_operand.hbm [shape: f32[2,4,256], index: 1, kind: input, shape index: {}]   ;;  %s906_s2 = inlined_call_operand.hbm [shape: f32[2,4,256], index: 2, kind: output, shape index: {}]  }
   0x1   :  { %9 = vsyncpa [#allocation3 + $0x1], 0 }
   0x2   :  { %10 = vsyncpa [#allocation6], 0 }
   0x3   :  { %12 = vsyncpa [#allocation6 + $0x1], 0 }
   0x4   :  { %13 = vsyncpa [#allocation4], 0 }
   0x5   :  { %15 = vsyncpa [#allocation4 + $0x1], 0  ;;  %s689_s9 = smov 0   ;;  %s691_s10 = smov 0  }
   0x6   :  { %s693_s11 = smov 0   ;;  %s695_s12 = smov 0  }
   0x7   :  { %s697_s13 = smov 0   ;;  %s699_s14 = smov 0  }
   0x8 LB: > { %s430_s15 = sadd.s32 4294967295, %s668_s14   ;;  %s431_s16 = sadd.s32 4294967294, %s668_s14   ;;  %s668_s14 = sphi %s699_s14, %s21_s14   ;;  %s664_s13 = sphi %s697_s13, %s926_s13   ;;  %s660_s12 = sphi %s695_s12, %s925_s12   ;;  %s656_s11 = sphi %s693_s11, %s924_s11   ;;  %s652_s10 = sphi %s691_s10, %s923_s10   ;;  %s648_s9 = sphi %s689_s9, %s922_s9  }
   0x9   : > { %s33_s17 = sadd.s32 1, %s664_s13  ;;  %s40_s18 = sadd.s32 1, %s656_s11 }
   0xa   : > { %p35_p0 = scmp.ge.s32.totalorder %s33_s17, 2  ;;  %p47_p1 = scmp.ne.s32.totalorder %s656_s11, %s652_s10 }
   0xb   : > { %p48_p2 = scmp.eq.s32.totalorder %s668_s14, 0  ;;  %p53_p3 = scmp.ne.s32.totalorder %s652_s10, %s648_s9 }
   0xc   : > { %s928_s17 = smov (%p35_p0, %s33_s17), 0  ;;  %p54_p5 = scmp.eq.s32.totalorder %s430_s15, 0 }
   0xd   : > { %p730_p4 = por %p48_p2, %p47_p1  ;;  %s37_s20 = ssub.s32 %s664_s13, %s928_s17 }
   0xe   : > { %p107_p6 = scmp.eq.s32.totalorder %s430_s15, 1  ;;  %p38_p7 = scmp.eq.s32.totalorder %s37_s20, 0 }
   0xf   : > { %p736_p8 = por %p54_p5, %p53_p3  ;;  %p113_p10 = scmp.eq.s32.totalorder %s431_s16, 1 }
  0x10   : > { %p740_p9 = por %p107_p6, %p47_p1  ;;  %p470_p13 = scmp.lt.s32.totalorder %s668_s14, 2 }
  0x11   : > { %s910_s21 = scalar_select %p736_p8, 1, 0 }
  0x12   : > { %s911_s22 = scalar_select %p740_p9, 1, 0 }
  0x13   : > { %s745_s23 = scalar_select %p38_p7, %s656_s11, %s40_s18  }
  0x14   : > { %p747_p11 = por %p113_p10, %p53_p3  ;;  %s754_s25 = sand.u32 1, %s656_s11  }
  0x15   : > { %s434_s26 = sshll.u32 %s754_s25, 2  ;;  %s435_s27 = sshll.u32 %s664_s13, 6 }
  0x16   : > { %s912_s24 = scalar_select %p747_p11, 1, 0 }
  0x17   : > { %s761_s30 = scalar_lea.hbm %s904_s0, %s435_s27  ;;  %s137_s3 = scalar_lea.vmem [#allocation2], %s434_s26 }
  0x18   : > { %s144_s4 = sshll.u32 %s137_s3, 4  ;;  %p767_p0 = pnand %p470_p13, %p730_p4  ;;  %s763_s4 = int_to_ptr.vmem [resolvable:$true] %s144_s4 }
  0x19   : > { %s134_s6 = scalar_lea.sflag [#allocation3], %s754_s25  ;;  %s522_s7 = scalar_lea.hbm %s761_s30, 64 }
  0x1a   : > { %p523_p3 = scmp.ne.s32.totalorder %s761_s30, %s522_s7  ;;  %p524_p5 = pneg %p767_p0 }
  0x1b   : > { %s527_s16 = scalar_lea.hbm %s904_s0, 128  ;;  %p528_p4 = scmp.lt.u32.totalorder %s761_s30, %s904_s0 }
  0x1c   : > { %p525_p6 = pnand %p524_p5, %p523_p3  ;;  %p529_p10 = scmp.lt.u32.totalorder %s527_s16, %s522_s7 }
  0x1d   : > { %p531_p12 = scmp.lt.u32.totalorder %s522_s7, %s761_s30 }
  0x1e   : > { %p526_p7 = pneg %p525_p6  ;;  %p530_p13 = por %p529_p10, %p528_p4 }
  0x20   : > { %p532_p1 = por %p531_p12, %p530_p13 }
  0x22   : > { %p533_p2 = pnand %p532_p1, %p526_p7 }
  0x24   : > { %536 = shalt.err (!%p533_p2)
}
  0x25   : > { %s537_s20 = scalar_lea.vmem %s763_s4, 64  ;;  %s670_s26 = smov [#allocation2]  }
  0x26   : > { %p538_p3 = scmp.ne.s32.totalorder %s763_s4, %s537_s20  ;;  %s542_s27 = sshll.u32 %s670_s26, 4  ;;  %s543_s27 = int_to_ptr.vmem [resolvable:$false] %s542_s27 }
  0x27   : > { %s544_s28 = scalar_lea.vmem %s543_s27, 128  ;;  %p545_p9 = scmp.lt.s32.totalorder %s763_s4, %s543_s27 }
  0x28   : > { %p540_p6 = pnand %p538_p3, %p524_p5  ;;  %p546_p4 = scmp.lt.s32.totalorder %s544_s28, %s537_s20 }
  0x2a   : > { %p541_p11 = pneg %p540_p6  ;;  %p547_p10 = por %p546_p4, %p545_p9 }
  0x2c   : > { %p548_p12 = pnand %p547_p10, %p541_p11 }
  0x2e   : > { %551 = shalt.err (!%p548_p12)
}
  0x2f   : > { %462 = dma.hbm_to_vmem [thread:$0]  (!%p767_p0), %s761_s30, 64, %s763_s4, %s134_s6  }
  0x30   : > { %p914_p1 = scmp.lt.s32.totalorder %s668_s14, 3  ;;  %p915_p2 = scmp.ge.s32.totalorder %s668_s14, 1 }
  0x31   : > { %s436_s3 = sshll.u32 %s754_s25, 3  ;;  %s451_s7 = sshll.u32 %s664_s13, 7 }
  0x32   : > { %p803_p7 = pnand %p915_p2, %p914_p1  ;;  %s812_s16 = scalar_lea.hbm %s905_s1, %s451_s7 }
  0x33   : > { %s155_s18 = scalar_lea.vmem [#allocation5], %s436_s3  ;;  %s152_s30 = scalar_lea.sflag [#allocation6], %s754_s25 }
  0x34   : > { %s916_s29 = scalar_select %p803_p7, 1, 0 }
  0x35   : > { %s165_s19 = sshll.u32 %s155_s18, 4  ;;  %s552_s4 = scalar_lea.hbm %s812_s16, 128  ;;  %s166_s19 = int_to_ptr.vmem [resolvable:$true] %s165_s19 }
  0x36   : > { %p553_p9 = scmp.ne.s32.totalorder %s812_s16, %s552_s4  ;;  %s557_s26 = scalar_lea.hbm %s905_s1, 256 }
  0x37   : > { %p558_p3 = scmp.lt.u32.totalorder %s812_s16, %s905_s1  ;;  %p559_p6 = scmp.lt.u32.totalorder %s557_s26, %s552_s4 }
  0x38   : > { %p555_p11 = pnand %p553_p9, %p524_p5  ;;  %p561_p10 = scmp.lt.u32.totalorder %s552_s4, %s812_s16 }
  0x39   : > { %p560_p4 = por %p559_p6, %p558_p3 }
  0x3a   : > { %p556_p13 = pneg %p555_p11 }
  0x3b   : > { %p562_p12 = por %p561_p10, %p560_p4 }
  0x3d   : > { %p563_p1 = pnand %p562_p12, %p556_p13 }
  0x3f   : > { %566 = shalt.err (!%p563_p1)
}
  0x40   : > { %s567_s25 = scalar_lea.vmem %s166_s19, 128  ;;  %s671_s3 = smov [#allocation5]  }
  0x41   : > { %p568_p2 = scmp.ne.s32.totalorder %s166_s19, %s567_s25  ;;  %s572_s7 = sshll.u32 %s671_s3, 4  ;;  %s573_s7 = int_to_ptr.vmem [resolvable:$false] %s572_s7 }
  0x42   : > { %s574_s8 = scalar_lea.vmem %s573_s7, 256  ;;  %p575_p8 = scmp.lt.s32.totalorder %s166_s19, %s573_s7 }
  0x43   : > { %p570_p9 = pnand %p568_p2, %p524_p5  ;;  %p576_p7 = scmp.lt.s32.totalorder %s574_s8, %s567_s25 }
  0x45   : > { %p571_p11 = pneg %p570_p9  ;;  %p577_p3 = por %p576_p7, %p575_p8 }
  0x47   : > { %p578_p6 = pnand %p577_p3, %p571_p11 }
  0x49   : > { %581 = shalt.err (!%p578_p6)
}
  0x4a   : > { %465 = dma.hbm_to_vmem [thread:$0]  (!%p767_p0), %s812_s16, 128, %s166_s19, %s152_s30  }
  0x4b   : > { %p917_p13 = scmp.ne.s32.totalorder %s916_s29, 0 }
  0x4c   : > { %s837_s15 = sand.u32 (!%p917_p13), 1, %s652_s10   ;;  %p918_p5 = scmp.ne.s32.totalorder (!%p917_p13), %s910_s21, 0 }
  0x4d   : > { %174 = sbr.rel (%p917_p13) target bundleno = 322 (0x142), region = 28  ;;  %s440_s18 = sshll.u32 (!%p917_p13), %s837_s15, 2 }
  0x4e   : > { %s177_s4 = scalar_lea.sflag (!%p917_p13), [#allocation3], %s837_s15  ;;  %s180_s6 = scalar_lea.vmem (!%p917_p13), [#allocation2], %s440_s18 }
  0x54   : > { %635 = dma.done.wait (%p918_p5), %s177_s4, 64  }
  0x55   : > { %637 = vsyncadd (%p918_p5), %s177_s4, 4294967232  ;;  %s441_s5 = sshll.u32 %s837_s15, 3  ;;  %s186_s29 = scalar_lea.sflag [#allocation6], %s837_s15 }
  0x56   : > { %s189_s16 = scalar_lea.vmem [#allocation5], %s441_s5 }
  0x57   : > { %639 = dma.done.wait (%p918_p5), %s186_s29, 128  }
  0x58   : > { %641 = vsyncadd (%p918_p5), %s186_s29, 4294967168  ;;  %v672_v0 = vmov 0.0   ;;  %v218_v1 = vld [vmem:[%s189_s16] sm:$0xff]  ;;  %vm225_vm0 = vcmask 1043456   ;;  %v217_v3 = vld [vmem:[%s180_s6] sm:$0xf] }
  0x59   : > { %294 = vmatprep.mubr.f32.mxu0 %v672_v0  ;;  %v220_v2 = vcombine.high %v218_v1, %v218_v1  ;;  %vm221_vm1 = vcmask 31744   ;;  %s452_s19 = sshll.u32 %s660_s12, 7  ;;  %s214_s30 = scalar_lea.vmem [#allocation7], %s441_s5 }
  0x5a   : > { %s323_s20 = sshll.u32 %s214_s30, 4  ;;  %s855_s27 = scalar_lea.hbm %s906_s2, %s452_s19  ;;  %s857_s20 = int_to_ptr.vmem [resolvable:$true] %s323_s20 }
  0x5b   : > { %443 = vmatprep.subr.msk.mxu0 %vm225_vm0, %v220_v2  ;;  %s307_s28 = scalar_lea.sflag [#allocation4], %s837_s15  ;;  %s582_s25 = scalar_lea.vmem %s857_s20, 128 }
  0x5c   : > { %444 = vmatpush1.msk.msra.mxu0 %vm225_vm0, %v218_v1  ;;  %p583_p8 = scmp.ne.s32.totalorder %s857_s20, %s582_s25  ;;  %p919_p0 = scmp.ne.s32.totalorder %s911_s22, 0 }
  0x5d   : > { %445 = vmatmul.mubr.msk.f32.vlgmr.msra.gmra.mrb[0].mxu0 %vm221_vm1, %v217_v3  ;;  %s673_s12 = smov [#allocation7]  }
  0x5e   : > { %p584_p7 = pnand %p583_p8, %p919_p0  ;;  %s586_s3 = sshll.u32 %s673_s12, 4  ;;  %s587_s3 = int_to_ptr.vmem [resolvable:$false] %s586_s3 }
  0x5f   : > { %s588_s7 = scalar_lea.vmem %s587_s3, 256  ;;  %p589_p10 = scmp.lt.s32.totalorder %s857_s20, %s587_s3 }
  0x60   : > { %p585_p4 = pneg %p584_p7  ;;  %p590_p12 = scmp.lt.s32.totalorder %s588_s7, %s582_s25 }
  0x62   : > { %p591_p1 = por %p590_p12, %p589_p10 }
  0x64   : > { %p592_p2 = pnand %p591_p1, %p585_p4 }
 0x130   : > { %v296_v4 = vpop.f32.mrb[0].mxu0 }
 0x131   : > { %v298_v5 = vpop.f32.mrb[1].mxu0 }
 0x132   : > { %v303_v6 = vcombine.low %v296_v4, %v298_v5 }
 0x134   : > { %305 = vst [vmem:[%s214_s30] sm:$0xff] %v303_v6 }
 0x135   : > { %595 = shalt.err (!%p592_p2)
}
 0x136   : > { %s596_s8 = scalar_lea.hbm %s855_s27, 128  ;;  %s600_s4 = scalar_lea.hbm %s906_s2, 256 }
 0x137   : > { %p597_p9 = scmp.ne.s32.totalorder %s855_s27, %s596_s8  ;;  %p601_p6 = scmp.lt.u32.totalorder %s855_s27, %s906_s2 }
 0x138   : > { %p602_p13 = scmp.lt.u32.totalorder %s600_s4, %s596_s8  ;;  %p604_p8 = scmp.lt.u32.totalorder %s596_s8, %s855_s27 }
 0x139   : > { %p598_p11 = pnand %p597_p9, %p919_p0 }
 0x13a   : > { %p603_p5 = por %p602_p13, %p601_p6 }
 0x13b   : > { %p599_p3 = pneg %p598_p11 }
 0x13c   : > { %p605_p7 = por %p604_p8, %p603_p5 }
 0x13e   : > { %p606_p4 = pnand %p605_p7, %p599_p3 }
 0x140   : > { %609 = shalt.err (!%p606_p4)
}
 0x141   : > { %457 = dma.vmem_to_hbm [thread:$0]  (%p919_p0), %s857_s20, 128, %s855_s27, %s307_s28  }
 0x142 PF: > { %s335_s29 = sand.u32 1, %s648_s9   ;;  %p920_p10 = scmp.ne.s32.totalorder %s912_s24, 0 }
 0x143   : > { %p921_p12 = scmp.ge.s32.totalorder %s668_s14, 2  ;;  %s336_s16 = scalar_lea.sflag [#allocation4], %s335_s29 }
 0x145   : > { %p467_p1 = pnand %p921_p12, %p920_p10 }
 0x147   : > { %643 = dma.done.wait (!%p467_p1), %s336_s16, 128  }
 0x148   : > { %645 = vsyncadd (!%p467_p1), %s336_s16, 4294967168  ;;  %s21_s14 = sadd.s32 1, %s668_s14   ;;  %s922_s9 = smov %s652_s10 }
 0x149   : > { %p18_p2 = scmp.ge.s32.totalorder %s21_s14, 4   ;;  %s923_s10 = smov %s656_s11 }
 0x14a   : > { %s924_s11 = smov %s745_s23  ;;  %s925_s12 = smov %s664_s13 }
 0x14b   : > { %s926_s13 = smov %s928_s17  ;;  %20 = sbr.rel (!%p18_p2) target bundleno = 8 (0x8), region = 86 }
 0x152   :  { %341 = vsyncpa [#allocation3], 1 }
 0x153   :  { %343 = vsyncpa [#allocation3 + $0x1], 1 }
 0x154   :  { %344 = vsyncpa [#allocation6], 1 }
 0x155   :  { %346 = vsyncpa [#allocation6 + $0x1], 1 }
 0x156   :  { %347 = vsyncpa [#allocation4], 1 }
 0x157   :  { %349 = vsyncpa [#allocation4 + $0x1], 1 }

</bundles_post_ra>
